<compile_context>
chip_gen: v7x
topology: tpu7x:2x2x1
jax: 0.10.0
libtpu: 0.0.40
codegen_flags: <defaults>
</compile_context>

<pallas_src>
import functools

import jax
import jax.numpy as jnp
from jax.experimental import pallas as pl
from jax.experimental.pallas import tpu as pltpu


# ----------------------------------------------------------------------------
# Fused kernel: whole SEBottleneck forward for one image per grid step
# ----------------------------------------------------------------------------
def _fused_se_bottleneck_kernel(
        x_ref,                     # (HW, C4) f32  : one image (conv1 input + residual)
        w1_ref, s1_ref, b1_ref,    # (C4, P) bf16, (1, P) f32, (1, P) f32
        w2_ref, s2_ref, b2_ref,    # (9P, P) bf16, (1, P) f32, (1, P) f32
        w3_ref, s3_ref, b3_ref,    # (P, C4) bf16, (1, C4) f32, (1, C4) f32
        fc1_ref, fc2_ref,          # (C4, Cr) bf16, (Cr, C4) bf16
        o_ref,                     # (HW, C4) f32
        *, H, W):
    HW = H * W
    xf = x_ref[...]                                          # f32, kept as residual

    # ---- conv1 (1x1) + bn1 + relu ------------------------------------------
    h1 = jnp.dot(xf.astype(w1_ref.dtype), w1_ref[...],
                 preferred_element_type=jnp.float32)          # (HW, P)
    h1 = jnp.maximum(h1 * s1_ref[...] + b1_ref[...], 0.0)

    # ---- conv2 (3x3, stride 1, pad 1) + bn2 + relu ---------------------------
    # Build the 9 taps with sublane rotations (XLU) + iota edge masks, pack
    # them (bf16) along the lane axis, and do ONE K = 9*P matmul.
    ridx = jax.lax.broadcasted_iota(jnp.int32, (HW, 1), 0)    # flattened row id
    widx = ridx % W                                           # w coordinate
    taps = []
    for dh in (-1, 0, 1):
        for dw in (-1, 0, 1):
            off = dh * W + dw
            # rolled[r] = h1[(r + off) mod HW]
            t = h1 if off == 0 else pltpu.roll(h1, shift=(-off) % HW, axis=0)
            cond = None
            if dh < 0:
                cond = ridx >= W                              # h - 1 >= 0
            elif dh > 0:
                cond = ridx < HW - W                          # h + 1 <= H - 1
            if dw < 0:
                c = widx >= 1                                 # w - 1 >= 0
                cond = c if cond is None else jnp.logical_and(cond, c)
            elif dw > 0:
                c = widx < W - 1                              # w + 1 <= W - 1
                cond = c if cond is None else jnp.logical_and(cond, c)
            if cond is not None:
                t = jnp.where(cond, t, 0.0)
            taps.append(t.astype(w2_ref.dtype))
    patch = jnp.concatenate(taps, axis=1)                     # (HW, 9P) bf16
    h2 = jnp.dot(patch, w2_ref[...], preferred_element_type=jnp.float32)
    h2 = jnp.maximum(h2 * s2_ref[...] + b2_ref[...], 0.0)     # (HW, P)

    # ---- conv3 (1x1) + bn3 ----------------------------------------------------
    y = jnp.dot(h2.astype(w3_ref.dtype), w3_ref[...],
                preferred_element_type=jnp.float32)            # (HW, C4)
    y = y * s3_ref[...] + b3_ref[...]

    # ---- SE: squeeze (global average pool) + excitation (once per image) ------
    mean = jnp.sum(y, axis=0, keepdims=True) * (1.0 / HW)      # (1, C4)
    e = jnp.maximum(
        jnp.dot(mean.astype(fc1_ref.dtype), fc1_ref[...],
                preferred_element_type=jnp.float32), 0.0)      # (1, Cr)
    scale = jax.nn.sigmoid(
        jnp.dot(e.astype(fc2_ref.dtype), fc2_ref[...],
                preferred_element_type=jnp.float32))           # (1, C4)

    # ---- channel scale + residual add + final relu ----------------------------
    o_ref[...] = jnp.maximum(y * scale + xf, 0.0).astype(o_ref.dtype)


# ----------------------------------------------------------------------------
# Wrapper
# ----------------------------------------------------------------------------
def fold_bn(gamma, beta, mean, var, eps=1e-5):
    scale = gamma / jnp.sqrt(var + eps)
    bias = beta - mean * scale
    return scale, bias


def _vmem_limit_bytes(HW, P, C4, Cr):
    """Rough per-block footprint (double-buffered I/O + weights + in-kernel
    temporaries), clamped to a sane [8 MiB, 48 MiB] range."""
    f32, bf16 = 4, 2
    io = 2 * 2 * HW * C4 * f32                                   # x + out, 2-deep
    w = bf16 * (C4 * P + 9 * P * P + P * C4 + 2 * C4 * Cr) + 6 * C4 * f32
    tmp = HW * (2 * P * f32 + 9 * P * (f32 + bf16) + 2 * C4 * f32)
    need = io + 2 * w + 2 * tmp
    return int(min(max(need, 8 << 20), 48 << 20))


def se_bottleneck_forward(x_nchw, p, *, compute_dtype=jnp.bfloat16):
    """Fused Pallas forward.  x_nchw: (B, inplanes, H, W), stride=1,
    downsample=None (so inplanes must equal planes*4).  Output: f32 NCHW."""
    B, Cin, H, W = x_nchw.shape
    planes = p["conv1_w"].shape[0]
    C4 = p["conv3_w"].shape[0]
    Cr = p["fc1_w"].shape[0]
    assert Cin == C4, "downsample=None requires inplanes == planes * 4"
    HW = H * W
    assert HW % 8 == 0, "H*W must be a multiple of 8 for the row-block layout"

    # Single materialization of the input (f32); also serves as the residual.
    x2 = jnp.transpose(x_nchw, (0, 2, 3, 1)).astype(jnp.float32).reshape(B * HW, Cin)

    s1, b1 = fold_bn(*p["bn1"])
    s2, b2 = fold_bn(*p["bn2"])
    s3, b3 = fold_bn(*p["bn3"])
    s1, b1, s2, b2, s3, b3 = [t.reshape(1, -1).astype(jnp.float32)
                              for t in (s1, b1, s2, b2, s3, b3)]

    cd = compute_dtype
    w1 = jnp.transpose(p["conv1_w"][:, :, 0, 0], (1, 0)).astype(cd)   # (C4, P)
    w2 = jnp.transpose(p["conv2_w"], (2, 3, 1, 0)).reshape(
        9 * planes, planes).astype(cd)                                # (9P, P), rows (kh, kw, cin)
    w3 = jnp.transpose(p["conv3_w"][:, :, 0, 0], (1, 0)).astype(cd)   # (P, C4)
    fc1 = jnp.transpose(p["fc1_w"], (1, 0)).astype(cd)                # (C4, Cr)
    fc2 = jnp.transpose(p["fc2_w"], (1, 0)).astype(cd)                # (Cr, C4)

    def full(shape):
        return pl.BlockSpec(shape, lambda b: (0,) * len(shape))

    out2 = pl.pallas_call(
        functools.partial(_fused_se_bottleneck_kernel, H=H, W=W),
        out_shape=jax.ShapeDtypeStruct((B * HW, C4), jnp.float32),
        grid=(B,),
        in_specs=[
            pl.BlockSpec((HW, Cin), lambda b: (b, 0)),       # per-image input block
            full((Cin, planes)), full((1, planes)), full((1, planes)),
            full((9 * planes, planes)), full((1, planes)), full((1, planes)),
            full((planes, C4)), full((1, C4)), full((1, C4)),
            full((C4, Cr)), full((Cr, C4)),
        ],
        out_specs=pl.BlockSpec((HW, C4), lambda b: (b, 0)),
        compiler_params=pltpu.CompilerParams(
            dimension_semantics=("parallel",),
            vmem_limit_bytes=_vmem_limit_bytes(HW, planes, C4, Cr)),
    )(x2, w1, s1, b1, w2, s2, b2, w3, s3, b3, fc1, fc2)

    return jnp.transpose(out2.reshape(B, H, W, C4), (0, 3, 1, 2))     # NCHW


# ----------------------------------------------------------------------------
# Parameter setup (deterministic)
# ----------------------------------------------------------------------------
def init_params(key, inplanes, planes, reduction=16):
    c4 = planes * 4
    cr = c4 // reduction
    ks = jax.random.split(key, 8)

    def w(k, shape, s=0.1):
        return (s * jax.random.normal(k, shape)).astype(jnp.float32)

    def bn(k, c):
        k1, k2, k3, k4 = jax.random.split(k, 4)
        gamma = jax.random.uniform(k1, (c,), minval=0.5, maxval=1.5)
        beta = 0.1 * jax.random.normal(k2, (c,))
        mean = 0.1 * jax.random.normal(k3, (c,))
        var = jax.random.uniform(k4, (c,), minval=0.5, maxval=1.5)
        return (gamma.astype(jnp.float32), beta.astype(jnp.float32),
                mean.astype(jnp.float32), var.astype(jnp.float32))

    return {
        # PyTorch conv weights: (Cout, Cin, kh, kw)
        "conv1_w": w(ks[0], (planes, inplanes, 1, 1)),
        "conv2_w": w(ks[1], (planes, planes, 3, 3)),
        "conv3_w": w(ks[2], (c4, planes, 1, 1)),
        "bn1": bn(ks[3], planes),
        "bn2": bn(ks[4], planes),
        "bn3": bn(ks[5], c4),
        # nn.Linear weights: (out, in)
        "fc1_w": w(ks[6], (cr, c4)),
        "fc2_w": w(ks[7], (c4, cr)),
    }


# ----------------------------------------------------------------------------
# Pure-JAX (XLA) reference mirroring PyTorch semantics, for verification
# ----------------------------------------------------------------------------
def reference_forward(x, p):
    def conv(x, w, stride=1, pad=0):
        return jax.lax.conv_general_dilated(
            x, w, (stride, stride), [(pad, pad), (pad, pad)],
            dimension_numbers=("NCHW", "OIHW", "NCHW"))

    def bn(x, params, eps=1e-5):
        g, b, m, v = [t.reshape(1, -1, 1, 1) for t in params]
        return (x - m) / jnp.sqrt(v + eps) * g + b

    relu = jax.nn.relu
    residual = x
    out = relu(bn(conv(x, p["conv1_w"]), p["bn1"]))
    out = relu(bn(conv(out, p["conv2_w"], pad=1), p["bn2"]))
    out = bn(conv(out, p["conv3_w"]), p["bn3"])
    y = jnp.mean(out, axis=(2, 3))                                    # (B, C)
    y = relu(y @ p["fc1_w"].T)
    y = jax.nn.sigmoid(y @ p["fc2_w"].T)
    out = out * y[:, :, None, None]
    return relu(out + residual)


if __name__ == "__main__":
    B, inplanes, planes, H, W = 2, 64, 16, 8, 8   # planes*4 == inplanes
    key = jax.random.PRNGKey(0)
    kx, kp = jax.random.split(key)
    x = jax.random.normal(kx, (B, inplanes, H, W), dtype=jnp.float32)
    params = init_params(kp, inplanes, planes, reduction=16)

    out = jax.block_until_ready(se_bottleneck_forward(x, params))
    ref = jax.block_until_ready(reference_forward(x, params))

    assert out.shape == (B, planes * 4, H, W)
    # bf16 MXU inputs (f32 accumulation) -> loose tolerance vs. the f32 ref.
    assert jnp.allclose(out, ref, atol=5e-2, rtol=5e-2), (
        float(jnp.max(jnp.abs(out - ref))))

    print("KERNEL_OK")
</pallas_src>

<mosaic_0001>
module attributes {stable_mosaic.version = 11 : i64} {
  func.func @_fused_se_bottleneck_kernel(%arg0: i32, %arg1: memref<64x64xf32, #tpu.memory_space<vmem>>, %arg2: memref<64x16xbf16, #tpu.memory_space<vmem>>, %arg3: memref<1x16xf32, #tpu.memory_space<vmem>>, %arg4: memref<1x16xf32, #tpu.memory_space<vmem>>, %arg5: memref<144x16xbf16, #tpu.memory_space<vmem>>, %arg6: memref<1x16xf32, #tpu.memory_space<vmem>>, %arg7: memref<1x16xf32, #tpu.memory_space<vmem>>, %arg8: memref<16x64xbf16, #tpu.memory_space<vmem>>, %arg9: memref<1x64xf32, #tpu.memory_space<vmem>>, %arg10: memref<1x64xf32, #tpu.memory_space<vmem>>, %arg11: memref<64x4xbf16, #tpu.memory_space<vmem>>, %arg12: memref<4x64xbf16, #tpu.memory_space<vmem>>, %arg13: memref<64x64xf32, #tpu.memory_space<vmem>>) attributes {dimension_semantics = [#tpu.dimension_semantics<parallel>], iteration_bounds = array<i64: 2>, scalar_prefetch = 0 : i64, scratch_operands = 0 : i64, tpu.core_type = #tpu.core_type<tc>, window_params = [{transform_indices = @transform_0, window_bounds = array<i64: 64, 64>}, {pipeline_mode = #tpu.pipeline_mode<synchronous>, transform_indices = @transform_1, window_bounds = array<i64: 64, 16>}, {pipeline_mode = #tpu.pipeline_mode<synchronous>, transform_indices = @transform_2, window_bounds = array<i64: 1, 16>}, {pipeline_mode = #tpu.pipeline_mode<synchronous>, transform_indices = @transform_3, window_bounds = array<i64: 1, 16>}, {pipeline_mode = #tpu.pipeline_mode<synchronous>, transform_indices = @transform_4, window_bounds = array<i64: 144, 16>}, {pipeline_mode = #tpu.pipeline_mode<synchronous>, transform_indices = @transform_5, window_bounds = array<i64: 1, 16>}, {pipeline_mode = #tpu.pipeline_mode<synchronous>, transform_indices = @transform_6, window_bounds = array<i64: 1, 16>}, {pipeline_mode = #tpu.pipeline_mode<synchronous>, transform_indices = @transform_7, window_bounds = array<i64: 16, 64>}, {pipeline_mode = #tpu.pipeline_mode<synchronous>, transform_indices = @transform_8, window_bounds = array<i64: 1, 64>}, {pipeline_mode = #tpu.pipeline_mode<synchronous>, transform_indices = @transform_9, window_bounds = array<i64: 1, 64>}, {pipeline_mode = #tpu.pipeline_mode<synchronous>, transform_indices = @transform_10, window_bounds = array<i64: 64, 4>}, {pipeline_mode = #tpu.pipeline_mode<synchronous>, transform_indices = @transform_11, window_bounds = array<i64: 4, 64>}, {transform_indices = @transform_12, window_bounds = array<i64: 64, 64>}]} {
    %c0 = arith.constant 0 : index
    %c0_0 = arith.constant 0 : index
    %0 = vector.load %arg1[%c0, %c0_0] : memref<64x64xf32, #tpu.memory_space<vmem>>, vector<64x64xf32>
    %1 = arith.truncf %0 : vector<64x64xf32> to vector<64x64xbf16>
    %c0_1 = arith.constant 0 : index
    %c0_2 = arith.constant 0 : index
    %2 = vector.load %arg2[%c0_1, %c0_2] : memref<64x16xbf16, #tpu.memory_space<vmem>>, vector<64x16xbf16>
    %cst = arith.constant dense<0.000000e+00> : vector<64x16xf32>
    %3 = tpu.matmul %1, %2, %cst {dimension_numbers = #tpu.dot_dimension_numbers<[1], [0], [0], [1], [0, 0, 1, 1], [], []>} : vector<64x64xbf16>, vector<64x16xbf16>, vector<64x16xf32> -> vector<64x16xf32>
    %c0_3 = arith.constant 0 : index
    %c0_4 = arith.constant 0 : index
    %4 = vector.load %arg3[%c0_3, %c0_4] : memref<1x16xf32, #tpu.memory_space<vmem>>, vector<1x16xf32>
    %5 = vector.broadcast %4 : vector<1x16xf32> to vector<64x16xf32>
    %6 = arith.mulf %3, %5 : vector<64x16xf32>
    %c0_5 = arith.constant 0 : index
    %c0_6 = arith.constant 0 : index
    %7 = vector.load %arg4[%c0_5, %c0_6] : memref<1x16xf32, #tpu.memory_space<vmem>>, vector<1x16xf32>
    %8 = vector.broadcast %7 : vector<1x16xf32> to vector<64x16xf32>
    %9 = arith.addf %6, %8 : vector<64x16xf32>
    %cst_7 = arith.constant 0.000000e+00 : f32
    %10 = vector.broadcast %cst_7 : f32 to vector<64x16xf32>
    %11 = arith.maximumf %9, %10 : vector<64x16xf32>
    %12 = tpu.iota {dimensions = array<i32: 0>} : vector<64x1xi32>
    %c8_i32 = arith.constant 8 : i32
    %c0_i32 = arith.constant 0 : i32
    %13 = arith.cmpi eq, %c8_i32, %c0_i32 : i32
    %c1_i32 = arith.constant 1 : i32
    %14 = arith.select %13, %c1_i32, %c8_i32 : i32
    %15 = vector.broadcast %14 : i32 to vector<64x1xi32>
    %16 = arith.remsi %12, %15 : vector<64x1xi32>
    %c0_i32_8 = arith.constant 0 : i32
    %17 = vector.broadcast %c0_i32_8 : i32 to vector<64x1xi32>
    %18 = arith.cmpi ne, %16, %17 : vector<64x1xi32>
    %c0_i32_9 = arith.constant 0 : i32
    %19 = vector.broadcast %c0_i32_9 : i32 to vector<64x1xi32>
    %20 = arith.cmpi slt, %16, %19 : vector<64x1xi32>
    %c0_i32_10 = arith.constant 0 : i32
    %21 = arith.cmpi slt, %14, %c0_i32_10 : i32
    %22 = vector.broadcast %21 : i1 to vector<64x1xi1>
    %23 = vector.broadcast %22 : vector<64x1xi1> to vector<64x1xi1>
    %24 = arith.xori %20, %23 : vector<64x1xi1>
    %25 = arith.andi %24, %18 : vector<64x1xi1>
    %26 = vector.broadcast %14 : i32 to vector<64x1xi32>
    %27 = arith.addi %16, %26 : vector<64x1xi32>
    %28 = arith.select %25, %27, %16 : vector<64x1xi1>, vector<64x1xi32>
    %c9_i32 = arith.constant 9 : i32
    %29 = tpu.dynamic_rotate %11 by %c9_i32 dim 0 : vector<64x16xf32>, i32 -> vector<64x16xf32>
    %c8_i32_11 = arith.constant 8 : i32
    %30 = vector.broadcast %c8_i32_11 : i32 to vector<64x1xi32>
    %31 = arith.cmpi sge, %12, %30 : vector<64x1xi32>
    %c1_i32_12 = arith.constant 1 : i32
    %32 = vector.broadcast %c1_i32_12 : i32 to vector<64x1xi32>
    %33 = arith.cmpi sge, %28, %32 : vector<64x1xi32>
    %34 = arith.andi %31, %33 : vector<64x1xi1>
    %cst_13 = arith.constant 0.000000e+00 : f32
    %35 = vector.shape_cast %34 : vector<64x1xi1> to vector<64x1xi1>
    %36 = vector.broadcast %35 : vector<64x1xi1> to vector<64x16xi1>
    %37 = vector.broadcast %cst_13 : f32 to vector<64x16xf32>
    %38 = arith.select %36, %29, %37 : vector<64x16xi1>, vector<64x16xf32>
    %39 = arith.truncf %38 : vector<64x16xf32> to vector<64x16xbf16>
    %c8_i32_14 = arith.constant 8 : i32
    %40 = tpu.dynamic_rotate %11 by %c8_i32_14 dim 0 : vector<64x16xf32>, i32 -> vector<64x16xf32>
    %c8_i32_15 = arith.constant 8 : i32
    %41 = vector.broadcast %c8_i32_15 : i32 to vector<64x1xi32>
    %42 = arith.cmpi sge, %12, %41 : vector<64x1xi32>
    %cst_16 = arith.constant 0.000000e+00 : f32
    %43 = vector.shape_cast %42 : vector<64x1xi1> to vector<64x1xi1>
    %44 = vector.broadcast %43 : vector<64x1xi1> to vector<64x16xi1>
    %45 = vector.broadcast %cst_16 : f32 to vector<64x16xf32>
    %46 = arith.select %44, %40, %45 : vector<64x16xi1>, vector<64x16xf32>
    %47 = arith.truncf %46 : vector<64x16xf32> to vector<64x16xbf16>
    %c7_i32 = arith.constant 7 : i32
    %48 = tpu.dynamic_rotate %11 by %c7_i32 dim 0 : vector<64x16xf32>, i32 -> vector<64x16xf32>
    %c8_i32_17 = arith.constant 8 : i32
    %49 = vector.broadcast %c8_i32_17 : i32 to vector<64x1xi32>
    %50 = arith.cmpi sge, %12, %49 : vector<64x1xi32>
    %c7_i32_18 = arith.constant 7 : i32
    %51 = vector.broadcast %c7_i32_18 : i32 to vector<64x1xi32>
    %52 = arith.cmpi slt, %28, %51 : vector<64x1xi32>
    %53 = arith.andi %50, %52 : vector<64x1xi1>
    %cst_19 = arith.constant 0.000000e+00 : f32
    %54 = vector.shape_cast %53 : vector<64x1xi1> to vector<64x1xi1>
    %55 = vector.broadcast %54 : vector<64x1xi1> to vector<64x16xi1>
    %56 = vector.broadcast %cst_19 : f32 to vector<64x16xf32>
    %57 = arith.select %55, %48, %56 : vector<64x16xi1>, vector<64x16xf32>
    %58 = arith.truncf %57 : vector<64x16xf32> to vector<64x16xbf16>
    %c1_i32_20 = arith.constant 1 : i32
    %59 = tpu.dynamic_rotate %11 by %c1_i32_20 dim 0 : vector<64x16xf32>, i32 -> vector<64x16xf32>
    %c1_i32_21 = arith.constant 1 : i32
    %60 = vector.broadcast %c1_i32_21 : i32 to vector<64x1xi32>
    %61 = arith.cmpi sge, %28, %60 : vector<64x1xi32>
    %cst_22 = arith.constant 0.000000e+00 : f32
    %62 = vector.shape_cast %61 : vector<64x1xi1> to vector<64x1xi1>
    %63 = vector.broadcast %62 : vector<64x1xi1> to vector<64x16xi1>
    %64 = vector.broadcast %cst_22 : f32 to vector<64x16xf32>
    %65 = arith.select %63, %59, %64 : vector<64x16xi1>, vector<64x16xf32>
    %66 = arith.truncf %65 : vector<64x16xf32> to vector<64x16xbf16>
    %67 = arith.truncf %11 : vector<64x16xf32> to vector<64x16xbf16>
    %c63_i32 = arith.constant 63 : i32
    %68 = tpu.dynamic_rotate %11 by %c63_i32 dim 0 : vector<64x16xf32>, i32 -> vector<64x16xf32>
    %c7_i32_23 = arith.constant 7 : i32
    %69 = vector.broadcast %c7_i32_23 : i32 to vector<64x1xi32>
    %70 = arith.cmpi slt, %28, %69 : vector<64x1xi32>
    %cst_24 = arith.constant 0.000000e+00 : f32
    %71 = vector.shape_cast %70 : vector<64x1xi1> to vector<64x1xi1>
    %72 = vector.broadcast %71 : vector<64x1xi1> to vector<64x16xi1>
    %73 = vector.broadcast %cst_24 : f32 to vector<64x16xf32>
    %74 = arith.select %72, %68, %73 : vector<64x16xi1>, vector<64x16xf32>
    %75 = arith.truncf %74 : vector<64x16xf32> to vector<64x16xbf16>
    %c57_i32 = arith.constant 57 : i32
    %76 = tpu.dynamic_rotate %11 by %c57_i32 dim 0 : vector<64x16xf32>, i32 -> vector<64x16xf32>
    %c56_i32 = arith.constant 56 : i32
    %77 = vector.broadcast %c56_i32 : i32 to vector<64x1xi32>
    %78 = arith.cmpi slt, %12, %77 : vector<64x1xi32>
    %c1_i32_25 = arith.constant 1 : i32
    %79 = vector.broadcast %c1_i32_25 : i32 to vector<64x1xi32>
    %80 = arith.cmpi sge, %28, %79 : vector<64x1xi32>
    %81 = arith.andi %78, %80 : vector<64x1xi1>
    %cst_26 = arith.constant 0.000000e+00 : f32
    %82 = vector.shape_cast %81 : vector<64x1xi1> to vector<64x1xi1>
    %83 = vector.broadcast %82 : vector<64x1xi1> to vector<64x16xi1>
    %84 = vector.broadcast %cst_26 : f32 to vector<64x16xf32>
    %85 = arith.select %83, %76, %84 : vector<64x16xi1>, vector<64x16xf32>
    %86 = arith.truncf %85 : vector<64x16xf32> to vector<64x16xbf16>
    %c56_i32_27 = arith.constant 56 : i32
    %87 = tpu.dynamic_rotate %11 by %c56_i32_27 dim 0 : vector<64x16xf32>, i32 -> vector<64x16xf32>
    %c56_i32_28 = arith.constant 56 : i32
    %88 = vector.broadcast %c56_i32_28 : i32 to vector<64x1xi32>
    %89 = arith.cmpi slt, %12, %88 : vector<64x1xi32>
    %cst_29 = arith.constant 0.000000e+00 : f32
    %90 = vector.shape_cast %89 : vector<64x1xi1> to vector<64x1xi1>
    %91 = vector.broadcast %90 : vector<64x1xi1> to vector<64x16xi1>
    %92 = vector.broadcast %cst_29 : f32 to vector<64x16xf32>
    %93 = arith.select %91, %87, %92 : vector<64x16xi1>, vector<64x16xf32>
    %94 = arith.truncf %93 : vector<64x16xf32> to vector<64x16xbf16>
    %c55_i32 = arith.constant 55 : i32
    %95 = tpu.dynamic_rotate %11 by %c55_i32 dim 0 : vector<64x16xf32>, i32 -> vector<64x16xf32>
    %c56_i32_30 = arith.constant 56 : i32
    %96 = vector.broadcast %c56_i32_30 : i32 to vector<64x1xi32>
    %97 = arith.cmpi slt, %12, %96 : vector<64x1xi32>
    %c7_i32_31 = arith.constant 7 : i32
    %98 = vector.broadcast %c7_i32_31 : i32 to vector<64x1xi32>
    %99 = arith.cmpi slt, %28, %98 : vector<64x1xi32>
    %100 = arith.andi %97, %99 : vector<64x1xi1>
    %cst_32 = arith.constant 0.000000e+00 : f32
    %101 = vector.shape_cast %100 : vector<64x1xi1> to vector<64x1xi1>
    %102 = vector.broadcast %101 : vector<64x1xi1> to vector<64x16xi1>
    %103 = vector.broadcast %cst_32 : f32 to vector<64x16xf32>
    %104 = arith.select %102, %95, %103 : vector<64x16xi1>, vector<64x16xf32>
    %105 = arith.truncf %104 : vector<64x16xf32> to vector<64x16xbf16>
    %106 = tpu.concatenate %39, %47, %58, %66, %67, %75, %86, %94, %105 in 1 : vector<64x16xbf16>, vector<64x16xbf16>, vector<64x16xbf16>, vector<64x16xbf16>, vector<64x16xbf16>, vector<64x16xbf16>, vector<64x16xbf16>, vector<64x16xbf16>, vector<64x16xbf16> -> vector<64x144xbf16>
    %c0_33 = arith.constant 0 : index
    %c0_34 = arith.constant 0 : index
    %107 = vector.load %arg5[%c0_33, %c0_34] : memref<144x16xbf16, #tpu.memory_space<vmem>>, vector<144x16xbf16>
    %cst_35 = arith.constant dense<0.000000e+00> : vector<64x16xf32>
    %108 = tpu.matmul %106, %107, %cst_35 {dimension_numbers = #tpu.dot_dimension_numbers<[1], [0], [0], [1], [0, 0, 1, 1], [], []>} : vector<64x144xbf16>, vector<144x16xbf16>, vector<64x16xf32> -> vector<64x16xf32>
    %c0_36 = arith.constant 0 : index
    %c0_37 = arith.constant 0 : index
    %109 = vector.load %arg6[%c0_36, %c0_37] : memref<1x16xf32, #tpu.memory_space<vmem>>, vector<1x16xf32>
    %110 = vector.broadcast %109 : vector<1x16xf32> to vector<64x16xf32>
    %111 = arith.mulf %108, %110 : vector<64x16xf32>
    %c0_38 = arith.constant 0 : index
    %c0_39 = arith.constant 0 : index
    %112 = vector.load %arg7[%c0_38, %c0_39] : memref<1x16xf32, #tpu.memory_space<vmem>>, vector<1x16xf32>
    %113 = vector.broadcast %112 : vector<1x16xf32> to vector<64x16xf32>
    %114 = arith.addf %111, %113 : vector<64x16xf32>
    %cst_40 = arith.constant 0.000000e+00 : f32
    %115 = vector.broadcast %cst_40 : f32 to vector<64x16xf32>
    %116 = arith.maximumf %114, %115 : vector<64x16xf32>
    %117 = arith.truncf %116 : vector<64x16xf32> to vector<64x16xbf16>
    %c0_41 = arith.constant 0 : index
    %c0_42 = arith.constant 0 : index
    %118 = vector.load %arg8[%c0_41, %c0_42] : memref<16x64xbf16, #tpu.memory_space<vmem>>, vector<16x64xbf16>
    %cst_43 = arith.constant dense<0.000000e+00> : vector<64x64xf32>
    %119 = tpu.matmul %117, %118, %cst_43 {dimension_numbers = #tpu.dot_dimension_numbers<[1], [0], [0], [1], [0, 0, 1, 1], [], []>} : vector<64x16xbf16>, vector<16x64xbf16>, vector<64x64xf32> -> vector<64x64xf32>
    %c0_44 = arith.constant 0 : index
    %c0_45 = arith.constant 0 : index
    %120 = vector.load %arg9[%c0_44, %c0_45] : memref<1x64xf32, #tpu.memory_space<vmem>>, vector<1x64xf32>
    %121 = vector.broadcast %120 : vector<1x64xf32> to vector<64x64xf32>
    %122 = arith.mulf %119, %121 : vector<64x64xf32>
    %c0_46 = arith.constant 0 : index
    %c0_47 = arith.constant 0 : index
    %123 = vector.load %arg10[%c0_46, %c0_47] : memref<1x64xf32, #tpu.memory_space<vmem>>, vector<1x64xf32>
    %124 = vector.broadcast %123 : vector<1x64xf32> to vector<64x64xf32>
    %125 = arith.addf %122, %124 : vector<64x64xf32>
    %cst_48 = arith.constant dense<0.000000e+00> : vector<64xf32>
    %126 = vector.multi_reduction <add>, %125, %cst_48 [0] : vector<64x64xf32> to vector<64xf32>
    %127 = vector.shape_cast %126 : vector<64xf32> to vector<1x64xf32>
    %cst_49 = arith.constant 1.562500e-02 : f32
    %128 = vector.broadcast %cst_49 : f32 to vector<1x64xf32>
    %129 = arith.mulf %127, %128 : vector<1x64xf32>
    %130 = arith.truncf %129 : vector<1x64xf32> to vector<1x64xbf16>
    %c0_50 = arith.constant 0 : index
    %c0_51 = arith.constant 0 : index
    %131 = vector.load %arg11[%c0_50, %c0_51] : memref<64x4xbf16, #tpu.memory_space<vmem>>, vector<64x4xbf16>
    %cst_52 = arith.constant dense<0.000000e+00> : vector<1x4xf32>
    %132 = tpu.matmul %130, %131, %cst_52 {dimension_numbers = #tpu.dot_dimension_numbers<[1], [0], [0], [1], [0, 0, 1, 1], [], []>} : vector<1x64xbf16>, vector<64x4xbf16>, vector<1x4xf32> -> vector<1x4xf32>
    %cst_53 = arith.constant 0.000000e+00 : f32
    %133 = vector.broadcast %cst_53 : f32 to vector<1x4xf32>
    %134 = arith.maximumf %132, %133 : vector<1x4xf32>
    %135 = arith.truncf %134 : vector<1x4xf32> to vector<1x4xbf16>
    %c0_54 = arith.constant 0 : index
    %c0_55 = arith.constant 0 : index
    %136 = vector.load %arg12[%c0_54, %c0_55] : memref<4x64xbf16, #tpu.memory_space<vmem>>, vector<4x64xbf16>
    %cst_56 = arith.constant dense<0.000000e+00> : vector<1x64xf32>
    %137 = tpu.matmul %135, %136, %cst_56 {dimension_numbers = #tpu.dot_dimension_numbers<[1], [0], [0], [1], [0, 0, 1, 1], [], []>} : vector<1x4xbf16>, vector<4x64xbf16>, vector<1x64xf32> -> vector<1x64xf32>
    %138 = arith.negf %137 : vector<1x64xf32>
    %139 = math.exp %138 : vector<1x64xf32>
    %cst_57 = arith.constant 1.000000e+00 : f32
    %140 = vector.broadcast %cst_57 : f32 to vector<1x64xf32>
    %141 = arith.addf %140, %139 : vector<1x64xf32>
    %142 = arith.divf %140, %141 : vector<1x64xf32>
    %143 = vector.broadcast %142 : vector<1x64xf32> to vector<64x64xf32>
    %144 = arith.mulf %125, %143 : vector<64x64xf32>
    %145 = arith.addf %144, %0 : vector<64x64xf32>
    %cst_58 = arith.constant 0.000000e+00 : f32
    %146 = vector.broadcast %cst_58 : f32 to vector<64x64xf32>
    %147 = arith.maximumf %145, %146 : vector<64x64xf32>
    %c0_59 = arith.constant 0 : index
    %c0_60 = arith.constant 0 : index
    %148 = vector.load %arg13[%c0_59, %c0_60] : memref<64x64xf32, #tpu.memory_space<vmem>>, vector<64x64xf32>
    tpu.vector_store %arg13[%c0_59, %c0_60], %147 {strides = array<i32>} : memref<64x64xf32, #tpu.memory_space<vmem>>, vector<64x64xf32>,
    return
  }
  func.func @transform_0(%arg0: i32) -> (i32, i32) {
    %c0_i32 = arith.constant 0 : i32
    %c0_i32_0 = arith.constant 0 : i32
    return %arg0, %c0_i32 : i32, i32
  }
  func.func @transform_1(%arg0: i32) -> (i32, i32) {
    %c0_i32 = arith.constant 0 : i32
    %c0_i32_0 = arith.constant 0 : i32
    %c0_i32_1 = arith.constant 0 : i32
    return %c0_i32, %c0_i32_0 : i32, i32
  }
  func.func @transform_2(%arg0: i32) -> (i32, i32) {
    %c0_i32 = arith.constant 0 : i32
    %c0_i32_0 = arith.constant 0 : i32
    %c0_i32_1 = arith.constant 0 : i32
    return %c0_i32, %c0_i32_0 : i32, i32
  }
  func.func @transform_3(%arg0: i32) -> (i32, i32) {
    %c0_i32 = arith.constant 0 : i32
    %c0_i32_0 = arith.constant 0 : i32
    %c0_i32_1 = arith.constant 0 : i32
    return %c0_i32, %c0_i32_0 : i32, i32
  }
  func.func @transform_4(%arg0: i32) -> (i32, i32) {
    %c0_i32 = arith.constant 0 : i32
    %c0_i32_0 = arith.constant 0 : i32
    %c0_i32_1 = arith.constant 0 : i32
    return %c0_i32, %c0_i32_0 : i32, i32
  }
  func.func @transform_5(%arg0: i32) -> (i32, i32) {
    %c0_i32 = arith.constant 0 : i32
    %c0_i32_0 = arith.constant 0 : i32
    %c0_i32_1 = arith.constant 0 : i32
    return %c0_i32, %c0_i32_0 : i32, i32
  }
  func.func @transform_6(%arg0: i32) -> (i32, i32) {
    %c0_i32 = arith.constant 0 : i32
    %c0_i32_0 = arith.constant 0 : i32
    %c0_i32_1 = arith.constant 0 : i32
    return %c0_i32, %c0_i32_0 : i32, i32
  }
  func.func @transform_7(%arg0: i32) -> (i32, i32) {
    %c0_i32 = arith.constant 0 : i32
    %c0_i32_0 = arith.constant 0 : i32
    %c0_i32_1 = arith.constant 0 : i32
    return %c0_i32, %c0_i32_0 : i32, i32
  }
  func.func @transform_8(%arg0: i32) -> (i32, i32) {
    %c0_i32 = arith.constant 0 : i32
    %c0_i32_0 = arith.constant 0 : i32
    %c0_i32_1 = arith.constant 0 : i32
    return %c0_i32, %c0_i32_0 : i32, i32
  }
  func.func @transform_9(%arg0: i32) -> (i32, i32) {
    %c0_i32 = arith.constant 0 : i32
    %c0_i32_0 = arith.constant 0 : i32
    %c0_i32_1 = arith.constant 0 : i32
    return %c0_i32, %c0_i32_0 : i32, i32
  }
  func.func @transform_10(%arg0: i32) -> (i32, i32) {
    %c0_i32 = arith.constant 0 : i32
    %c0_i32_0 = arith.constant 0 : i32
    %c0_i32_1 = arith.constant 0 : i32
    return %c0_i32, %c0_i32_0 : i32, i32
  }
  func.func @transform_11(%arg0: i32) -> (i32, i32) {
    %c0_i32 = arith.constant 0 : i32
    %c0_i32_0 = arith.constant 0 : i32
    %c0_i32_1 = arith.constant 0 : i32
    return %c0_i32, %c0_i32_0 : i32, i32
  }
  func.func @transform_12(%arg0: i32) -> (i32, i32) {
    %c0_i32 = arith.constant 0 : i32
    %c0_i32_0 = arith.constant 0 : i32
    return %arg0, %c0_i32 : i32, i32
  }
}

</mosaic_0001>

<bundles_post_ra>
// kernel: tpu_custom_call.1
= control target key start
LH: loop header
LB: loop body
LE: loop exit
PB: predicated region body
PF: predicated region fallthrough
CT: control target
= control target key end

     0   :  { %s1953_s21 = smov 0   ;;  %s2581_s0 = inlined_call_operand.vmem [shape: f32[128,64], index: 0, kind: input, shape index: {}]   ;;  %s2582_s1 = inlined_call_operand.vmem [shape: bf16[64,16], index: 1, kind: input, shape index: {}]   ;;  %s2583_s2 = inlined_call_operand.vmem [shape: f32[1,16], index: 2, kind: input, shape index: {}]   ;;  %s2584_s3 = inlined_call_operand.vmem [shape: f32[1,16], index: 3, kind: input, shape index: {}]   ;;  %s2585_s4 = inlined_call_operand.vmem [shape: bf16[144,16], index: 4, kind: input, shape index: {}]   ;;  %s2586_s5 = inlined_call_operand.vmem [shape: f32[1,16], index: 5, kind: input, shape index: {}]   ;;  %s2587_s6 = inlined_call_operand.vmem [shape: f32[1,16], index: 6, kind: input, shape index: {}]   ;;  %s2588_s7 = inlined_call_operand.vmem [shape: bf16[16,64], index: 7, kind: input, shape index: {}]   ;;  %s2589_s8 = inlined_call_operand.vmem [shape: f32[1,64], index: 8, kind: input, shape index: {}]   ;;  %s2590_s9 = inlined_call_operand.vmem [shape: f32[1,64], index: 9, kind: input, shape index: {}]   ;;  %s2591_s10 = inlined_call_operand.vmem [shape: bf16[64,4], index: 10, kind: input, shape index: {}]   ;;  %s2592_s11 = inlined_call_operand.vmem [shape: bf16[4,64], index: 11, kind: input, shape index: {}]   ;;  %s2593_s12 = inlined_call_operand.vmem [shape: f32[128,64], index: 12, kind: output, shape index: {}]  }
   0x1 LB: > { %s1716_s22 = sadd.s32 4294967295, %s1876_s21   ;;  %p1720_p0 = scmp.ge.s32.totalorder %s1876_s21, 1  ;;  %s1876_s21 = sphi %s1953_s21, %s22_s21  }
   0x2   : > { %p363_p1 = scmp.lt.s32.totalorder %s1876_s21, 3 }
   0x4   : > { %p364_p2 = pnand %p1720_p0, %p363_p1 }
   0x5   : > { %v1848_v0 = vld [vmem:[%s2582_s1] sm:$0xff] (!%p364_p2)   ;;  %s1721_s25 = sshll.u32 (!%p364_p2), %s1716_s22, 3  ;;  %v1849_v1 = vld [vmem:[%s2582_s1 + $0x8] sm:$0xff] (!%p364_p2)   ;;  %v1850_v2 = vld [vmem:[%s2582_s1 + $0x10] sm:$0xff] (!%p364_p2)   ;;  %vm2594_vm0 = vcmask (!%p364_p2), 523264   ;;  %v1878_v17 = vmov (!%p364_p2), 0   ;;  %v578_v18 = vlaneseq (!%p364_p2) }
   0x6   : > { %367 = sbr.rel (%p364_p2) target bundleno = 1347 (0x543), region = 68  ;;  %p406_p3 = scmp.lt.s32.totalorder (!%p364_p2), %s1721_s25, 15  ;;  %1786 = vmatprep.subr.bf16.mxu0 (!%p364_p2), %v1848_v0  ;;  %v1851_v5 = vld [vmem:[%s2582_s1 + $0x18] sm:$0xff] (!%p364_p2)   ;;  %v1852_v16 = vld [vmem:[%s2585_s4] sm:$0xff] (!%p364_p2)   ;;  %1247 = vmatprep.subr.bf16.mxu1 (!%p364_p2), %v1878_v17  ;;  %v1853_v21 = vld [vmem:[%s2585_s4 + $0x8] sm:$0xff] (!%p364_p2)   ;;  %vm2595_vm5 = vcmask (!%p364_p2), 130048  }
   0x7   : > { %1787 = vmatpush3.bf16.msra.mxu0 (!%p364_p2), %v1848_v0  ;;  %1248 = vmatpush1.bf16.msra.mxu1 (!%p364_p2), %v1852_v16  ;;  %v2014_v19 = vshrl.u32 (!%p364_p2), %v578_v18, 7  ;;  %v2023_v22 = vld [vmem:[%s2583_s2] ss:$0 sm:$0xff] (!%p364_p2)  ;;  %v1854_v29 = vld [vmem:[%s2585_s4 + $0x10] sm:$0xff] (!%p364_p2)   ;;  %v1855_v47 = vld [vmem:[%s2585_s4 + $0x18] sm:$0xff] (!%p364_p2)   ;;  %v1879_v0 = vmov (!%p364_p2), 0.0  }
   0x8   : > { %1788 = vmatprep.subr.bf16.mxu0 (!%p364_p2), %v1849_v1  ;;  %1249 = vmatprep.subr.bf16.mxu1 (!%p364_p2), %v1878_v17  ;;  %v2029_v26 = vld [vmem:[%s2584_s3] ss:$0 sm:$0xff] (!%p364_p2)  ;;  %s1880_s17 = smov (!%p364_p2), 16   ;;  %s1881_s18 = smov (!%p364_p2), 64  }
   0x9   : > { %v580_v20 = vadd.s32 (!%p364_p2), 8, %v2014_v19  ;;  %v591_v23 = vand.u32 (!%p364_p2), 7, %v2014_v19  ;;  %v581_v27 = vadd.s32 (!%p364_p2), 16, %v2014_v19  ;;  %v582_v28 = vadd.s32 (!%p364_p2), 24, %v2014_v19  ;;  %s1882_s22 = smov (!%p364_p2), 112   ;;  %s1883_s26 = smov (!%p364_p2), 96  }
   0xa   : > { %v2039_v32 = vadd.s32 (!%p364_p2), 32, %v2014_v19  ;;  %vm788_vm1 = vcmp.lt.s32.totalorder (!%p364_p2), %v2014_v19, 7  ;;  %v2044_v35 = vadd.s32 (!%p364_p2), 40, %v2014_v19  ;;  %v2047_v36 = vadd.s32 (!%p364_p2), 48, %v2014_v19  ;;  %s1884_s29 = smov (!%p364_p2), 32   ;;  %s1885_s13 = smov (!%p364_p2), 48  }
   0xb   : > { %1789 = vmatpush3.bf16.msra.mxu0 (!%p364_p2), %v1849_v1  ;;  %v598_v24 = vand.u32 (!%p364_p2), 7, %v580_v20  ;;  %1250 = vmatpush1.bf16.msra.mxu1 (!%p364_p2), %v1853_v21  ;;  %vm2051_vm2 = vcmp.lt.s32.totalorder (!%p364_p2), %v591_v23, 7  ;;  %v2060_v42 = vadd.s32 (!%p364_p2), 56, %v2014_v19  ;;  %v605_v45 = vand.u32 (!%p364_p2), 7, %v581_v27  ;;  %s1886_s16 = smov (!%p364_p2), 80  }
   0xc   : > { %1790 = vmatprep.subr.bf16.mxu0 (!%p364_p2), %v1850_v2  ;;  %1251 = vmatprep.subr.bf16.mxu1 (!%p364_p2), %v1878_v17  ;;  %v612_v46 = vand.u32 (!%p364_p2), 7, %v582_v28  ;;  %vm691_vm4 = vcmp.lt.s32.totalorder (!%p364_p2), %v2014_v19, 1  ;;  %v619_v50 = vand.u32 (!%p364_p2), 7, %v2039_v32  ;;  %vm2076_vm6 = vcmp.ge.s32.totalorder (!%p364_p2), %v591_v23, 1  ;;  %v1856_v23 = vld [vmem:[%s2585_s4 + $0x20] sm:$0xff] (!%p364_p2)  }
   0xd   : > { %s2661_s25 = smov (!%p406_p3, %s1721_s25), 15  ;;  %vm2055_vm3 = vcmp.lt.s32.totalorder %v598_v24, 7  ;;  %vm2080_vm7 = vcmp.ge.s32.totalorder %v598_v24, 1  ;;  %v626_v55 = vand.u32 7, %v2044_v35  ;;  %v633_v56 = vand.u32 7, %v2047_v36 }
   0xe   : > { %s1722_s30 = sshll.u32 %s2661_s25, 3  ;;  %v640_v60 = vand.u32 7, %v2060_v42  ;;  %vm2095_vm8 = vcmp.ge.s32.totalorder %v605_v45, 1  ;;  %vm2099_vm9 = vcmp.ge.s32.totalorder %v612_v46, 1  ;;  %vm2109_vm10 = vcmp.lt.s32.totalorder %v605_v45, 7  ;;  %v1857_v45 = vld [vmem:[%s2585_s4 + $0x28] sm:$0xff]  }
   0xf   : > { %s409_s15 = scalar_lea.vmem %s2581_s0, %s1722_s30  ;;  %1791 = vmatpush3.bf16.msra.mxu0 %v1850_v2  ;;  %1252 = vmatpush1.bf16.msra.mxu1 %v1854_v29  ;;  %vm2113_vm11 = vcmp.lt.s32.totalorder %v612_v46, 7  ;;  %vm2171_vm12 = vcmp.lt.s32.totalorder %v619_v50, 7  ;;  %vm2177_vm13 = vcmp.lt.s32.totalorder %v626_v55, 7  ;;  %vm2194_vm14 = vcmp.ge.s32.totalorder %v619_v50, 1 }
  0x10   : > { %v1978_v3 = vld [vmem:[%s409_s15] sm:$0xff]  ;;  %v1980_v4 = vld [vmem:[%s409_s15 + $0x8] sm:$0xff]  ;;  %v1987_v7 = vld [vmem:[%s409_s15 + $0x10] sm:$0xff]  ;;  %1792 = vmatprep.subr.bf16.mxu0 %v1851_v5  ;;  %1253 = vmatprep.subr.bf16.mxu1 %v1878_v17  ;;  %vm2218_vm15 = vcmp.ge.s32.totalorder %v626_v55, 1 }
  0x11   : > { %v426_v6 = vpack.c.bf16 %v1980_v4, %v1978_v3  ;;  %v1989_v8 = vld [vmem:[%s409_s15 + $0x18] sm:$0xff]  ;;  %v1992_v9 = vld [vmem:[%s409_s15 + $0x20] sm:$0xff]  ;;  %v1994_v10 = vld [vmem:[%s409_s15 + $0x28] sm:$0xff] }
  0x12   : > { %v427_v11 = vpack.c.bf16 %v1989_v8, %v1987_v7  ;;  %v428_v12 = vpack.c.bf16 %v1994_v10, %v1992_v9  ;;  %v2002_v13 = vld [vmem:[%s409_s15 + $0x30] sm:$0xff]  ;;  %v2004_v14 = vld [vmem:[%s409_s15 + $0x38] sm:$0xff] }
  0x13   : > { %1794 = vmatprep.mubr.msk.bf16.mxu0 %vm2594_vm0, %v426_v6  ;;  %1793 = vmatpush3.bf16.msra.mxu0 %v1851_v5  ;;  %v429_v15 = vpack.c.bf16 %v2004_v14, %v2002_v13 }
  0x14   : > { %1254 = vmatpush1.bf16.msra.mxu1 %v1855_v47 }
  0x15   : > { %1255 = vmatprep.subr.bf16.mxu1 %v1878_v17 }
  0x16   : > { %1795 = vmatmul.mubr.msk.bf16.vlgmr.msra.gmra.mrb[0].mxu0 %vm2594_vm0, %v427_v11 }
  0x17   : > { %1798 = vmatprep.mubr.msk.bf16.mxu0 %vm2594_vm0, %v428_v12 }
  0x18   : > { %1256 = vmatpush1.bf16.msra.mxu1 %v1856_v23 }
  0x19   : > { %1257 = vmatprep.subr.bf16.mxu1 %v1878_v17 }
  0x1c   : > { %1258 = vmatpush1.bf16.msra.mxu1 %v1857_v45 }
  0x1d   : > { %1259 = vmatprep.subr.bf16.mxu1 %v1878_v17 }
  0x1e   : > { %1799 = vmatmul.mubr.msk.bf16.gmra.mrb[4].mxu0 %vm2594_vm0, %v429_v15  ;;  %vm2249_vm0 = vcmp.ge.s32.totalorder %v640_v60, 1 }
  0xe9   : > { %v1796_v25 = vpop.f32.mrb[0].mxu0 }
  0xea   : > { %v549_v30 = vmul.f32 %v1796_v25, %v2023_v22  ;;  %v509_v31 = vpop.f32.mrb[1].mxu0 }
  0xeb   : > { %v547_v33 = vmul.f32 %v2023_v22, %v509_v31  ;;  %v1797_v34 = vpop.f32.mrb[2].mxu0 }
  0xec   : > { %v564_v37 = vadd.f32 %v2029_v26, %v549_v30  ;;  %v550_v38 = vmul.f32 %v1797_v34, %v2023_v22  ;;  %v512_v39 = vpop.f32.mrb[3].mxu0 }
  0xed   : > { %v562_v43 = vadd.f32 %v2029_v26, %v547_v33  ;;  %v548_v44 = vmul.f32 %v2023_v22, %v512_v39 }
  0xee   : > { %v2068_v48 = vmax.f32 %v564_v37, 0.0  ;;  %v565_v49 = vadd.f32 %v2029_v26, %v550_v38 }
  0xef   : > { %v2073_v51 = vmax.f32 %v562_v43, 0.0  ;;  %v563_v52 = vadd.f32 %v2029_v26, %v548_v44 }
  0xf0   : > { %v685_v57 = vrot.slane %v2068_v48, 7  ;;  %v2087_v58 = vmax.f32 %v565_v49, 0.0  ;;  %v782_v59 = vrot.slane %v2068_v48, 1 }
  0xf1   : > { %v683_v61 = vrot.slane %v2073_v51, 7  ;;  %v571_v62 = vmax.f32 %v563_v52, 0.0  ;;  %v1800_v63 = vpop.f32.mrb[4].mxu0  ;;  %v776_v1 = vpack.c.bf16 %v2073_v51, %v1879_v0  ;;  %v780_v2 = vrot.slane %v2073_v51, 1 }
  0xf2   : > { %v686_v11 = vrot.slane %v2087_v58, 7  ;;  %v553_v12 = vmul.f32 %v1800_v63, %v2023_v22  ;;  %v525_v15 = vpop.f32.mrb[5].mxu0  ;;  %v870_v16 = vpack.c.bf16 %v2087_v58, %v2068_v48  ;;  %v783_v18 = vrot.slane %v2087_v58, 1 }
  0xf3   : > { %v684_v24 = vrot.slane %v571_v62, 7  ;;  %v551_v25 = vmul.f32 %v2023_v22, %v525_v15  ;;  %1013 = vrot.lane.b32.xlu0 %v776_v1, %s1880_s17  ;;  %v1801_v27 = vpop.f32.mrb[6].mxu0  ;;  %v869_v28 = vpack.c.bf16 %v571_v62, %v2073_v51  ;;  %v781_v29 = vrot.slane %v571_v62, 1 }
  0xf4   : > { %v568_v30 = vadd.f32 %v2029_v26, %v553_v12  ;;  %v554_v31 = vmul.f32 %v1801_v27, %v2023_v22  ;;  %v528_v33 = vpop.f32.mrb[7].mxu0  ;;  %v2129_v34 = vsel %vm788_vm1, %v782_v59, %v783_v18  ;;  %v777_v37 = vpack.c.bf16 %v2068_v48, %v571_v62 }
  0xf5   : > { %v566_v38 = vadd.f32 %v2029_v26, %v551_v25  ;;  %v552_v39 = vmul.f32 %v2023_v22, %v528_v33  ;;  %1049 = vrot.lane.b32.xlu1 %v869_v28, %s1881_s18  ;;  %v794_v43 = vsel %vm788_vm1, %v781_v29, %v782_v59  ;;  %v795_v44 = vsel %vm788_vm1, %v780_v2, %v781_v29 }
  0xf6   : > { %v2144_v46 = vmax.f32 %v568_v30, 0.0  ;;  %v569_v47 = vadd.f32 %v2029_v26, %v554_v31  ;;  %v889_v22 = vsel %vm2051_vm2, %v795_v44, 0.0  ;;  %v997_v49 = vsel %vm2051_vm2, %v794_v43, 0.0 }
  0xf7   : > { %v2152_v52 = vmax.f32 %v566_v38, 0.0  ;;  %v567_v59 = vadd.f32 %v2029_v26, %v552_v39  ;;  %1051 = vrot.lane.b32.xlu0 %v870_v16, %s1881_s18  ;;  %v998_v62 = vsel %vm2055_vm3, %v2129_v34, 0.0  ;;  %v2163_v63 = vsel %vm691_vm4, %v684_v24, %v685_v57 }
  0xf8   : > { %v689_v40 = vrot.slane %v2144_v46, 7  ;;  %v786_v1 = vrot.slane %v2144_v46, 1  ;;  %v2167_v12 = vmax.f32 %v569_v47, 0.0  ;;  %v1005_v15 = vpack.c.bf16 %v998_v62, %v997_v49 }
  0xf9   : > { %v687_v23 = vrot.slane %v2152_v52, 7  ;;  %v784_v25 = vrot.slane %v2152_v52, 1  ;;  %v2183_v27 = vmax.f32 %v567_v59, 0.0  ;;  %1015 = vrot.lane.b32.xlu1 %v777_v37, %s1880_s17  ;;  %v2190_v28 = vsel %vm691_vm4, %v683_v61, %v684_v24 }
  0xfa   : > { %1744 = vmatprep.mubr.msk.bf16.mxu1 %vm2595_vm5, %v1005_v15  ;;  %v933_v30 = vsel %vm2076_vm6, %v2190_v28, 0.0  ;;  %v934_v31 = vsel %vm2080_vm7, %v2163_v63, 0.0  ;;  %v830_v24 = vsel %vm2055_vm3, %v795_v44, 0.0  ;;  %v2214_v32 = vsel %vm691_vm4, %v685_v57, %v686_v11  ;;  %v1858_v57 = vld [vmem:[%s2585_s4 + $0x30] sm:$0xff]  }
  0xfb   : > { %v688_v33 = vrot.slane %v2183_v27, 7  ;;  %v785_v38 = vrot.slane %v2183_v27, 1  ;;  %1085 = vrot.lane.b32.xlu0 %v777_v37, %s1882_s22  ;;  %v941_v39 = vpack.c.bf16 %v934_v31, %v933_v30  ;;  %v837_v48 = vpack.c.bf16 %v830_v24, %v1879_v0  ;;  %1260 = vmatpush1.bf16.msra.mxu1 %v1858_v57 }
  0xfc   : > { %v859_v35 = vsel %vm2095_vm8, %v2163_v63, 0.0  ;;  %v860_v55 = vsel %vm2099_vm9, %v2214_v32, 0.0  ;;  %v890_v44 = vsel %vm2055_vm3, %v794_v43, 0.0  ;;  %v2239_v37 = vpack.c.bf16 %v2152_v52, %v2087_v58  ;;  %1261 = vmatprep.subr.bf16.mxu1 %v1878_v17 }
  0xfd   : > { %vm2243_vm2 = vcmp.ge.s32.totalorder %v633_v56, 1  ;;  %1073 = vrot.lane.b32.xlu1 %v941_v39, %s1883_s26  ;;  %v866_v41 = vpack.c.bf16 %v860_v55, %v859_v35  ;;  %v897_v49 = vpack.c.bf16 %v890_v44, %v889_v22  ;;  %v831_v59 = vsel %vm2109_vm10, %v794_v43, 0.0 }
  0xfe   : > { %v832_v62 = vsel %vm2113_vm11, %v2129_v34, 0.0  ;;  %vm2261_vm3 = vcmp.lt.s32.totalorder %v633_v56, 7  ;;  %v2269_v22 = vsel %vm788_vm1, %v783_v18, %v784_v25  ;;  %v891_v43 = vsel %vm2109_vm10, %v2129_v34, 0.0  ;;  %v1859_v56 = vld [vmem:[%s2585_s4 + $0x38] sm:$0xff]  }
  0xff   : > { %v838_v30 = vpack.c.bf16 %v832_v62, %v831_v59  ;;  %v690_v31 = vrot.slane %v2167_v12, 7  ;;  %vm2277_vm5 = vcmp.lt.s32.totalorder %v640_v60, 7  ;;  %1025 = vrot.lane.b32.xlu0 %v837_v48, %s1884_s29  ;;  %v892_v18 = vsel %vm2113_vm11, %v2269_v22, 0.0  ;;  %1262 = vmatpush1.bf16.msra.mxu1 %v1859_v56  ;;  %v1860_v59 = vld [vmem:[%s2585_s4 + $0x40] sm:$0xff]  }
 0x100   : > { %v858_v42 = vsel %vm2080_vm7, %v2190_v28, 0.0  ;;  %v695_v60 = vsel %vm691_vm4, %v686_v11, %v687_v23  ;;  %v935_v34 = vsel %vm2095_vm8, %v2214_v32, 0.0  ;;  %v898_v24 = vpack.c.bf16 %v892_v18, %v891_v43  ;;  %1263 = vmatprep.subr.bf16.mxu1 %v1878_v17 }
 0x101   : > { %v2303_v39 = vsel %vm691_vm4, %v690_v31, %v683_v61  ;;  %v936_v48 = vsel %vm2099_vm9, %v695_v60, 0.0  ;;  %v871_v58 = vpack.c.bf16 %v2183_v27, %v2152_v52  ;;  %1039 = vrot.lane.b32.xlu1 %v866_v41, %s1885_s13  ;;  %v779_v61 = vpack.c.bf16 %v2144_v46, %v2183_v27 }
 0x102   : > { %v857_v11 = vsel %vm2076_vm6, %v2303_v39, 0.0  ;;  %v741_v57 = vsel %vm2080_vm7, %v2303_v39, 0.0  ;;  %v942_v35 = vpack.c.bf16 %v936_v48, %v935_v34  ;;  %v694_v44 = vsel %vm691_vm4, %v687_v23, %v688_v33 }
 0x103   : > { %v865_v55 = vpack.c.bf16 %v858_v42, %v857_v11  ;;  %v861_v41 = vsel %vm2194_vm14, %v695_v60, 0.0  ;;  %v791_v53 = vsel %vm788_vm1, %v784_v25, %v785_v38  ;;  %1061 = vrot.lane.b32.xlu0 %v897_v49, %s1886_s16  ;;  %v862_v62 = vsel %vm2218_vm15, %v694_v44, 0.0  ;;  %1264 = vmatpush1.bf16.msra.mxu1 %v1860_v59 }
 0x104   : > { %v833_v23 = vsel %vm2171_vm12, %v2269_v22, 0.0  ;;  %v834_v43 = vsel %vm2177_vm13, %v791_v53, 0.0  ;;  %v790_v17 = vsel %vm788_vm1, %v785_v38, %v786_v1  ;;  %v867_v25 = vpack.c.bf16 %v862_v62, %v861_v41 }
 0x105   : > { %v839_v56 = vpack.c.bf16 %v834_v43, %v833_v23  ;;  %v893_v49 = vsel %vm2171_vm12, %v791_v53, 0.0  ;;  %v894_v18 = vsel %vm2177_vm13, %v790_v17, 0.0  ;;  %1087 = vrot.lane.b32.xlu1 %v2239_v37, %s1882_s22  ;;  %v693_v34 = vsel %vm691_vm4, %v688_v33, %v689_v40 }
 0x106   : > { %v899_v42 = vpack.c.bf16 %v894_v18, %v893_v49  ;;  %v937_v38 = vsel %vm2194_vm14, %v694_v44, 0.0  ;;  %v872_v48 = vpack.c.bf16 %v2167_v12, %v2144_v46  ;;  %v938_v11 = vsel %vm2218_vm15, %v693_v34, 0.0 }
 0x107   : > { %v787_v41 = vrot.slane %v2167_v12, 1  ;;  %v835_v62 = vsel %vm2261_vm3, %v790_v17, 0.0  ;;  %v692_v33 = vsel %vm691_vm4, %v689_v40, %v690_v31  ;;  %1027 = vrot.lane.b32.xlu0 %v838_v30, %s1884_s29  ;;  %v943_v23 = vpack.c.bf16 %v938_v11, %v937_v38 }
 0x108   : > { %v863_v43 = vsel %vm2243_vm2, %v693_v34, 0.0  ;;  %v864_v59 = vsel %vm2249_vm0, %v692_v33, 0.0  ;;  %v747_v49 = vsel %vm2249_vm0, %v693_v34, 0.0  ;;  %v743_v34 = vsel %vm2099_vm9, %v2163_v63, 0.0 }
 0x109   : > { %v789_v18 = vsel %vm788_vm1, %v786_v1, %v787_v41  ;;  %v2382_v40 = vsel %vm788_vm1, %v787_v41, %v780_v2  ;;  %v868_v30 = vpack.c.bf16 %v864_v59, %v863_v43  ;;  %1063 = vrot.lane.b32.xlu1 %v898_v24, %s1886_s16  ;;  %v742_v24 = vsel %vm2095_vm8, %v2190_v28, 0.0 }
 0x10a   : > { %v895_v31 = vsel %vm2261_vm3, %v789_v18, 0.0  ;;  %v896_v47 = vsel %vm2277_vm5, %v2382_v40, 0.0  ;;  %v1003_v46 = vsel %vm2261_vm3, %v2382_v40, 0.0  ;;  %v836_v51 = vsel %vm2277_vm5, %v789_v18, 0.0 }
 0x10b   : > { %v900_v1 = vpack.c.bf16 %v896_v47, %v895_v31  ;;  %v840_v2 = vpack.c.bf16 %v836_v51, %v835_v62  ;;  %1017 = vrot.lane.b32.xlu0 %v2239_v37, %s1880_s17  ;;  %v749_v38 = vpack.c.bf16 %v743_v34, %v742_v24  ;;  %v744_v11 = vsel %vm2194_vm14, %v2214_v32, 0.0 }
 0x10c   : > { %v745_v36 = vsel %vm2218_vm15, %v695_v60, 0.0  ;;  %v999_v5 = vsel %vm2109_vm10, %v2269_v22, 0.0  ;;  %v1000_v6 = vsel %vm2113_vm11, %v791_v53, 0.0  ;;  %v746_v63 = vsel %vm2243_vm2, %v694_v44, 0.0 }
 0x10d   : > { %1037 = vrot.lane.b32.xlu1 %v865_v55, %s1885_s13  ;;  %v2409_v41 = vpack.c.bf16 %v745_v36, %v744_v11  ;;  %v1001_v28 = vsel %vm2171_vm12, %v790_v17, 0.0  ;;  %v1002_v29 = vsel %vm2177_vm13, %v789_v18, 0.0  ;;  %v1006_v32 = vpack.c.bf16 %v1000_v6, %v999_v5 }
 0x10e   : > { %v2423_v50 = vpack.c.bf16 %v747_v49, %v746_v63  ;;  %v2425_v37 = vpack.c.bf16 %v1002_v29, %v1001_v28  ;;  %v939_v20 = vsel %vm2243_vm2, %v692_v33, 0.0  ;;  %v972_v52 = vpack.c.bf16 %v1879_v0, %v2167_v12 }
 0x10f   : > { %1075 = vrot.lane.b32.xlu0 %v942_v35, %s1883_s26  ;;  %v944_v21 = vpack.c.bf16 %v1879_v0, %v939_v20  ;;  %v748_v12 = vpack.c.bf16 %v741_v57, %v1879_v0  ;;  %vm1106_vm0 = vcmask 261120   ;;  %vm2628_vm1 = vcmask 130048  }
 0x110   : > { %vm2629_vm4 = vmmov %vm2628_vm1  ;;  %vm1115_vm5 = vcmask 392192   ;;  %vm1141_vm6 = vcmask 785408   ;;  %vm1132_vm8 = vcmask 654336   ;;  %vm2630_vm9 = vcmask 523264  }
 0x111   : > { %1053 = vrot.lane.b32.xlu1 %v871_v58, %s1881_s18  ;;  %vm1150_vm7 = vcmask 916480   ;;  %vm2631_vm10 = vmmov %vm2630_vm9  ;;  %v1008_v20 = vpack.c.bf16 %v1879_v0, %v1003_v46 }
 0x112   : > { %vm2632_vm11 = vmmov %vm2628_vm1 }
 0x113   : > { %1089 = vrot.lane.b32.xlu0 %v779_v61, %s1882_s22  ;;  %vm2633_vm12 = vmmov %vm2628_vm1 }
 0x114   : > { %vm2634_vm13 = vmmov %vm2630_vm9 }
 0x115   : > { %1019 = vrot.lane.b32.xlu1 %v779_v61, %s1880_s17  ;;  %vm2635_vm14 = vmmov %vm2628_vm1 }
 0x116   : > { %vm2636_vm15 = vmmov %vm2628_vm1 }
 0x117   : > { %1041 = vrot.lane.b32.xlu0 %v867_v25, %s1885_s13  ;;  %vm2637_vm2 = vmmov %vm2628_vm1 }
 0x118   : > { %vm2639_vm3 = vmmov %vm2637_vm2 }
 0x119   : > { %1029 = vrot.lane.b32.xlu1 %v839_v56, %s1884_s29 }
 0x11b   : > { %1065 = vrot.lane.b32.xlu0 %v899_v42, %s1886_s16 }
 0x11d   : > { %1077 = vrot.lane.b32.xlu1 %v943_v23, %s1883_s26 }
 0x11f   : > { %1055 = vrot.lane.b32.xlu0 %v872_v48, %s1881_s18 }
 0x121   : > { %1067 = vrot.lane.b32.xlu1 %v900_v1, %s1886_s16 }
 0x123   : > { %1031 = vrot.lane.b32.xlu0 %v840_v2, %s1884_s29 }
 0x125   : > { %1043 = vrot.lane.b32.xlu1 %v868_v30, %s1885_s13 }
 0x127   : > { %1079 = vrot.lane.b32.xlu0 %v944_v21, %s1883_s26  ;;  %s415_s26 = scalar_lea.vmem %s2593_s12, %s1722_s30 }
 0x129   : > { %1091 = vrot.lane.b32.xlu1 %v972_v52, %s1882_s22 }
 0x165   : > { %v1014_v26 = vpop.permute.xlu0 %1013 }
 0x166   : > { %v1096_v25 = vsel %vm2628_vm1, %v748_v12, %v1014_v26  ;;  %vm2638_vm1 = vmmov %vm2630_vm9 }
 0x167   : > { %v1050_v16 = vpop.permute.xlu1 %1049 }
 0x169   : > { %v1052_v27 = vpop.permute.xlu0 %1051 }
 0x16b   : > { %v1016_v22 = vpop.permute.xlu1 %1015 }
 0x16c   : > { %v1099_v56 = vsel %vm2629_vm4, %v749_v38, %v1016_v22 }
 0x16d   : > { %v1086_v60 = vpop.permute.xlu0 %1085 }
 0x16f   : > { %v1074_v45 = vpop.permute.xlu1 %1073 }
 0x171   : > { %v1026_v58 = vpop.permute.xlu0 %1025 }
 0x172   : > { %v1108_v42 = vsel %vm1106_vm0, %v1096_v25, %v1026_v58 }
 0x173   : > { %v1040_v35 = vpop.permute.xlu1 %1039 }
 0x175   : > { %v1062_v61 = vpop.permute.xlu0 %1061 }
 0x177   : > { %v1088_v55 = vpop.permute.xlu1 %1087 }
 0x179   : > { %v1028_v44 = vpop.permute.xlu0 %1027 }
 0x17a   : > { %v1110_v48 = vsel %vm1106_vm0, %v1099_v56, %v1028_v44 }
 0x17b   : > { %v1064_v53 = vpop.permute.xlu1 %1063  ;;  %v1119_v57 = vsel %vm1115_vm5, %v1110_v48, %v1040_v35  ;;  %v1749_v35 = vld [vmem:[%s2587_s6] ss:$0 sm:$0xff] }
 0x17c   : > { %v1127_v18 = vsel %vm2631_vm10, %v1119_v57, %v1052_v27  ;;  %vm2646_vm10 = vmmov %vm2638_vm1 }
 0x17d   : > { %v1018_v17 = vpop.permute.xlu0 %1017  ;;  %v1136_v47 = vsel %vm1132_vm8, %v1127_v18, %v1064_v53 }
 0x17e   : > { %v1102_v2 = vsel %vm2633_vm12, %v2409_v41, %v1018_v17  ;;  %vm2648_vm12 = vmmov %vm2638_vm1 }
 0x17f   : > { %v1038_v62 = vpop.permute.xlu1 %1037 }
 0x180   : > { %v1117_v33 = vsel %vm1115_vm5, %v1108_v42, %v1038_v62 }
 0x181   : > { %v1125_v54 = vsel %vm2630_vm9, %v1117_v33, %v1050_v16  ;;  %v1076_v39 = vpop.permute.xlu0 %1075  ;;  %vm2644_vm9 = vmmov %vm2638_vm1 }
 0x182   : > { %v1134_v23 = vsel %vm1132_vm8, %v1125_v54, %v1062_v61  ;;  %v1145_v51 = vsel %vm1141_vm6, %v1136_v47, %v1076_v39 }
 0x183   : > { %v1054_v43 = vpop.permute.xlu1 %1053  ;;  %v1143_v59 = vsel %vm1141_vm6, %v1134_v23, %v1074_v45  ;;  %v1155_v38 = vsel %vm1150_vm7, %v1145_v51, %v1088_v55  ;;  %v1748_v45 = vld [vmem:[%s2586_s5] ss:$0 sm:$0xff] }
 0x184   : > { %v1152_v49 = vsel %vm1150_vm7, %v1143_v59, %v1086_v60 }
 0x185   : > { %1280 = vmatmul.mubr.bf16.vlgmr.msra.gmra.mrb[0].mxu1 %v1152_v49  ;;  %v1090_v30 = vpop.permute.xlu0 %1089 }
 0x186   : > { %1745 = vmatprep.mubr.msk.bf16.mxu1 %vm2632_vm11, %v1006_v32  ;;  %vm2647_vm11 = vmmov %vm2638_vm1 }
 0x187   : > { %v1020_v31 = vpop.permute.xlu1 %1019 }
 0x188   : > { %v1105_v21 = vsel %vm2636_vm15, %v2423_v50, %v1020_v31  ;;  %v1861_v50 = vld [vmem:[%s2588_s7] sm:$0xff]   ;;  %vm1574_vm15 = vcmask 1041408  }
 0x189   : > { %v1042_v1 = vpop.permute.xlu0 %1041  ;;  %1802 = vmatprep.subr.bf16.mxu0 %v1861_v50 }
 0x18a   : > { %1803 = vmatpush3.bf16.msra.mxu0 %v1861_v50 }
 0x18b   : > { %v1030_v24 = vpop.permute.xlu1 %1029  ;;  %1812 = vmatprep.subr.bf16.mxu0 %v1879_v0 }
 0x18c   : > { %v1112_v34 = vsel %vm1106_vm0, %v1102_v2, %v1030_v24 }
 0x18d   : > { %v1121_v11 = vsel %vm1115_vm5, %v1112_v34, %v1042_v1  ;;  %1288 = vmatmul.mubr.bf16.gmra.mrb[4].mxu1 %v1155_v38  ;;  %v1066_v36 = vpop.permute.xlu0 %1065 }
 0x18e   : > { %v1129_v5 = vsel %vm2634_vm13, %v1121_v11, %v1054_v43  ;;  %1746 = vmatprep.mubr.msk.bf16.mxu1 %vm2635_vm14, %v2425_v37  ;;  %vm2649_vm13 = vmmov %vm2638_vm1 }
 0x18f   : > { %v1138_v6 = vsel %vm1132_vm8, %v1129_v5, %v1066_v36  ;;  %v1078_v63 = vpop.permute.xlu1 %1077  ;;  %vm2650_vm14 = vmmov %vm2638_vm1 }
 0x190   : > { %v1147_v28 = vsel %vm1141_vm6, %v1138_v6, %v1078_v63 }
 0x191   : > { %v1056_v41 = vpop.permute.xlu0 %1055  ;;  %v1158_v32 = vsel %vm1150_vm7, %v1147_v28, %v1090_v30 }
 0x193   : > { %v1068_v29 = vpop.permute.xlu1 %1067 }
 0x195   : > { %v1032_v52 = vpop.permute.xlu0 %1031  ;;  %1296 = vmatmul.mubr.bf16.gmra.mrb[8].mxu1 %v1158_v32 }
 0x196   : > { %v1114_v37 = vsel %vm1106_vm0, %v1105_v21, %v1032_v52  ;;  %1747 = vmatprep.mubr.msk.bf16.mxu1 %vm2637_vm2, %v1008_v20  ;;  %vm2640_vm0 = vmmov %vm2637_vm2 }
 0x197   : > { %v1044_v26 = vpop.permute.xlu1 %1043  ;;  %vm2641_vm4 = vmmov %vm2640_vm0 }
 0x198   : > { %v1123_v16 = vsel %vm1115_vm5, %v1114_v37, %v1044_v26  ;;  %vm2642_vm5 = vmmov %vm2640_vm0 }
 0x199   : > { %v1131_v27 = vsel %vm2638_vm1, %v1123_v16, %v1056_v41  ;;  %v1080_v22 = vpop.permute.xlu0 %1079  ;;  %v1862_v16 = vld [vmem:[%s2591_s10] sm:$0xff]   ;;  %vm2651_vm2 = vmmov %vm2638_vm1 }
 0x19a   : > { %v1140_v15 = vsel %vm1132_vm8, %v1131_v27, %v1068_v29  ;;  %v1863_v27 = vld [vmem:[%s2591_s10 + $0x8] sm:$0xff]   ;;  %vm2643_vm8 = vmmov %vm2638_vm1 }
 0x19b   : > { %v1149_v40 = vsel %vm1141_vm6, %v1140_v15, %v1080_v22  ;;  %v1092_v46 = vpop.permute.xlu1 %1091  ;;  %vm1887_vm6 = vmmov 0   ;;  %v1864_v22 = vld [vmem:[%s2591_s10 + $0x10] sm:$0xff]   ;;  %v1865_v15 = vld [vmem:[%s2591_s10 + $0x18] sm:$0xff]  }
 0x19c   : > { %v1161_v60 = vsel %vm1150_vm7, %v1149_v40, %v1092_v46  ;;  %v1755_v46 = vld [vmem:[%s2589_s8] ss:$0 sm:$0xff]  ;;  %vm2645_vm7 = vmmov %vm2638_vm1  ;;  %vm1570_vm1 = vcmask 31744  }
 0x19d   : > { %1304 = vmatmul.mubr.bf16.gmra.mrb[12].mxu1 %v1161_v60 }
 0x258   : > { %v1281_v58 = vpop.f32.mrb[0].mxu1 }
 0x259   : > { %v1319_v61 = vmul.f32 %v1748_v45, %v1281_v58  ;;  %v1283_v55 = vpop.f32.mrb[1].mxu1 }
 0x25a   : > { %v1284_v44 = vpop.f32.mrb[2].mxu1 }
 0x25b   : > { %v1334_v53 = vadd.f32 %v1749_v35, %v1319_v61  ;;  %v1320_v12 = vmul.f32 %v1748_v45, %v1284_v44  ;;  %v1286_v17 = vpop.f32.mrb[3].mxu1  ;;  %v1756_v61 = vld [vmem:[%s2590_s9] ss:$0 sm:$0xff] }
 0x25d   : > { %v1335_v25 = vadd.f32 %v1749_v35, %v1320_v12  ;;  %v1342_v56 = vmax.f32 %v1334_v53, 0.0 }
 0x25f   : > { %v1343_v42 = vmax.f32 %v1335_v25, 0.0 }
 0x260   : > { %v1289_v48 = vpop.f32.mrb[4].mxu1 }
 0x261   : > { %v1350_v62 = vpack.c.bf16 %v1343_v42, %v1342_v56  ;;  %v1321_v33 = vmul.f32 %v1748_v45, %v1289_v48  ;;  %v1291_v54 = vpop.f32.mrb[5].mxu1 }
 0x262   : > { %v1292_v39 = vpop.f32.mrb[6].mxu1 }
 0x263   : > { %v1336_v57 = vadd.f32 %v1749_v35, %v1321_v33  ;;  %v1322_v23 = vmul.f32 %v1748_v45, %v1292_v39  ;;  %v1294_v43 = vpop.f32.mrb[7].mxu1  ;;  %1804 = vmatprep.mubr.msk.bf16.mxu0 %vm2639_vm3, %v1350_v62  ;;  %vm2652_vm3 = vmmov %vm2651_vm2 }
 0x265   : > { %v1337_v59 = vadd.f32 %v1749_v35, %v1322_v23  ;;  %v1344_v49 = vmax.f32 %v1336_v57, 0.0 }
 0x267   : > { %v1345_v18 = vmax.f32 %v1337_v59, 0.0 }
 0x268   : > { %v1297_v30 = vpop.f32.mrb[8].mxu1 }
 0x269   : > { %v1351_v31 = vpack.c.bf16 %v1345_v18, %v1344_v49  ;;  %v1323_v47 = vmul.f32 %v1748_v45, %v1297_v30  ;;  %v1299_v51 = vpop.f32.mrb[9].mxu1 }
 0x26a   : > { %v1300_v1 = vpop.f32.mrb[10].mxu1 }
 0x26b   : > { %v1338_v2 = vadd.f32 %v1749_v35, %v1323_v47  ;;  %v1324_v24 = vmul.f32 %v1748_v45, %v1300_v1  ;;  %v1302_v34 = vpop.f32.mrb[11].mxu1  ;;  %1805 = vmatmul.mubr.msk.bf16.vlgmr.msra.gmra.mrb[8].mxu0 %vm2640_vm0, %v1351_v31  ;;  %vm2653_vm0 = vmmov %vm2651_vm2 }
 0x26c   : > { %1813 = vmatpush3.bf16.msra.mxu0 %v1862_v16 }
 0x26d   : > { %v1339_v38 = vadd.f32 %v1749_v35, %v1324_v24  ;;  %v1346_v11 = vmax.f32 %v1338_v2, 0.0  ;;  %1814 = vmatprep.subr.bf16.mxu0 %v1879_v0 }
 0x26f   : > { %v1347_v36 = vmax.f32 %v1339_v38, 0.0 }
 0x270   : > { %v1305_v5 = vpop.f32.mrb[12].mxu1  ;;  %1815 = vmatpush3.bf16.msra.mxu0 %v1863_v27 }
 0x271   : > { %v1352_v6 = vpack.c.bf16 %v1347_v36, %v1346_v11  ;;  %v1325_v63 = vmul.f32 %v1748_v45, %v1305_v5  ;;  %v1307_v28 = vpop.f32.mrb[13].mxu1  ;;  %1816 = vmatprep.subr.bf16.mxu0 %v1879_v0 }
 0x272   : > { %v1308_v41 = vpop.f32.mrb[14].mxu1 }
 0x273   : > { %v1340_v29 = vadd.f32 %v1749_v35, %v1325_v63  ;;  %v1326_v32 = vmul.f32 %v1748_v45, %v1308_v41  ;;  %v1310_v20 = vpop.f32.mrb[15].mxu1  ;;  %1808 = vmatprep.mubr.msk.bf16.mxu0 %vm2641_vm4, %v1352_v6  ;;  %vm2654_vm4 = vmmov %vm2653_vm0 }
 0x274   : > { %1817 = vmatpush3.bf16.msra.mxu0 %v1864_v22 }
 0x275   : > { %v1341_v21 = vadd.f32 %v1749_v35, %v1326_v32  ;;  %v1348_v52 = vmax.f32 %v1340_v29, 0.0  ;;  %1818 = vmatprep.subr.bf16.mxu0 %v1879_v0 }
 0x277   : > { %v1349_v37 = vmax.f32 %v1341_v21, 0.0 }
 0x278   : > { %1819 = vmatpush3.bf16.msra.mxu0 %v1865_v15 }
 0x279   : > { %v1353_v26 = vpack.c.bf16 %v1349_v37, %v1348_v52  ;;  %1824 = vmatprep.subr.bf16.mxu0 %v1879_v0  ;;  %v1569_v52 = vld [vmem:[%s2592_s11] sm:$0x3] }
 0x27a   : > { %v1576_v16 = vsel %vm1574_vm15, %v1569_v52, 0 }
 0x27b   : > { %1809 = vmatmul.mubr.msk.bf16.gmra.mrb[12].mxu0 %vm2642_vm5, %v1353_v26  ;;  %vm2655_vm5 = vmmov %vm2653_vm0 }
 0x27c   : > { %1820 = vmatprep.mubr.msk.bf16.mxu0 %vm1887_vm6, %v1879_v0 }
 0x33e   : > { %v1806_v40 = vpop.f32.mrb[8].mxu0 }
 0x33f   : > { %v1408_v60 = vpop.f32.mrb[9].mxu0  ;;  %v1448_v44 = vmul.f32 %v1806_v40, %v1755_v46 }
 0x340   : > { %v1807_v50 = vpop.f32.mrb[10].mxu0  ;;  %v1446_v58 = vmul.f32 %v1755_v46, %v1408_v60 }
 0x341   : > { %v1411_v45 = vpop.f32.mrb[11].mxu0  ;;  %v2536_v17 = vadd.f32 %v1756_v61, %v1448_v44  ;;  %v1449_v56 = vmul.f32 %v1807_v50, %v1755_v46 }
 0x342   : > { %v1447_v35 = vmul.f32 %v1755_v46, %v1411_v45  ;;  %v2532_v53 = vadd.f32 %v1756_v61, %v1446_v58 }
 0x343   : > { %v1472_v48 = vsel %vm2645_vm7, %v2536_v17, 0.0  ;;  %v1464_v62 = vadd.f32 %v1756_v61, %v1449_v56  ;;  %vm2659_vm7 = vmmov %vm2653_vm0 }
 0x344   : > { %v2530_v55 = vadd.f32 %v1756_v61, %v1447_v35  ;;  %v1469_v25 = vsel %vm2644_vm9, %v2532_v53, 0.0  ;;  %vm2658_vm9 = vmmov %vm2653_vm0 }
 0x345   : > { %v1474_v49 = vsel %vm2646_vm10, %v1464_v62, 0.0 }
 0x346   : > { %v1470_v12 = vsel %vm2643_vm8, %v2530_v55, 0.0  ;;  %vm2657_vm8 = vmmov %vm2653_vm0 }
 0x347   : > { %v1471_v42 = vadd.f32 %v1470_v12, %v1469_v25 }
 0x349   : > { %v1473_v54 = vadd.f32 %v1472_v48, %v1471_v42 }
 0x34b   : > { %v1475_v47 = vadd.f32 %v1474_v49, %v1473_v54 }
 0x34e   : > { %v1810_v33 = vpop.f32.mrb[12].mxu0 }
 0x34f   : > { %v1424_v39 = vpop.f32.mrb[13].mxu0  ;;  %v1452_v57 = vmul.f32 %v1810_v33, %v1755_v46 }
 0x350   : > { %v1450_v23 = vmul.f32 %v1755_v46, %v1424_v39  ;;  %v1811_v43 = vpop.f32.mrb[14].mxu0 }
 0x351   : > { %v1427_v59 = vpop.f32.mrb[15].mxu0  ;;  %v1453_v30 = vmul.f32 %v1811_v43, %v1755_v46  ;;  %v1467_v51 = vadd.f32 %v1756_v61, %v1452_v57 }
 0x352   : > { %v1465_v18 = vadd.f32 %v1756_v61, %v1450_v23  ;;  %v1451_v31 = vmul.f32 %v1755_v46, %v1427_v59 }
 0x353   : > { %v1468_v34 = vadd.f32 %v1756_v61, %v1453_v30  ;;  %v1480_v36 = vsel %vm2649_vm13, %v1467_v51, 0.0 }
 0x354   : > { %v1476_v1 = vsel %vm2647_vm11, %v1465_v18, 0.0  ;;  %v1466_v2 = vadd.f32 %v1756_v61, %v1451_v31 }
 0x355   : > { %v1477_v24 = vadd.f32 %v1476_v1, %v1475_v47  ;;  %v1482_v6 = vsel %vm2650_vm14, %v1468_v34, 0.0 }
 0x356   : > { %v1478_v38 = vsel %vm2648_vm12, %v1466_v2, 0.0 }
 0x357   : > { %v1479_v11 = vadd.f32 %v1478_v38, %v1477_v24 }
 0x359   : > { %v1481_v5 = vadd.f32 %v1480_v36, %v1479_v11 }
 0x35b   : > { %v1483_v63 = vadd.f32 %v1482_v6, %v1481_v5 }
 0x35d   : > { %v1484_v28 = vrot.slane %v1483_v63, 4 }
 0x35f   : > { %v1485_v41 = vadd.f32 %v1484_v28, %v1483_v63 }
 0x361   : > { %v1486_v29 = vrot.slane %v1485_v41, 2 }
 0x363   : > { %v1487_v32 = vadd.f32 %v1486_v29, %v1485_v41 }
 0x365   : > { %v1488_v20 = vrot.slane %v1487_v32, 1 }
 0x367   : > { %v1489_v21 = vadd.f32 %v1488_v20, %v1487_v32 }
 0x369   : > { %v1490_v37 = vmul.f32 0.015625, %v1489_v21 }
 0x36b   : > { %v1491_v26 = vpack.c.bf16 %v1490_v37, %v1490_v37 }
 0x36d   : > { %1821 = vmatmul.mubr.msk.bf16.vlgmr.msra.gmra.mrb[16].mxu0 %vm2651_vm2, %v1491_v26 }
 0x36e   : > { %1825 = vmatpush3.bf16.msra.mxu0 %v1576_v16  ;;  %1826 = vmatprep.mubr.msk.bf16.mxu0 %vm1887_vm6, %v1879_v0  ;;  %v1626_v0 = vsub.s32 0, %v2014_v19  ;;  %vm2656_vm6 = vmmov %vm2653_vm0 }
 0x440   : > { %v1561_v27 = vpop.f32.mrb[16].mxu0 }
 0x441   : > { %v1567_v22 = vmax.f32 %v1561_v27, 0.0  ;;  %v1822_v15 = vpop.f32.mrb[17].mxu0 }
 0x442   : > { %v1564_v40 = vpop.f32.mrb[18].mxu0 }
 0x443   : > { %v1568_v46 = vpack.c.bf16 %v1567_v22, %v1567_v22  ;;  %v1823_v60 = vpop.f32.mrb[19].mxu0 }
 0x445   : > { %1827 = vmatmul.mubr.msk.bf16.vlgmr.msra.gmra.mrb[20].mxu0 %vm1570_vm1, %v1568_v46 }
 0x518   : > { %v1612_v50 = vpop.f32.mrb[20].mxu0 }
 0x519   : > { %v1763_v45 = vmul.f32 -1.442695, %v1612_v50  ;;  %v1828_v58 = vpop.f32.mrb[21].mxu0 }
 0x51a   : > { %v1615_v35 = vpop.f32.mrb[22].mxu0 }
 0x51b   : > { %1866 = vpow2.f32 %v1763_v45  ;;  %v1829_v61 = vpop.f32.mrb[23].mxu0 }
 0x525   : > { %v1867_v44 = vpop.eup %1866 }
 0x526   : > { %v1621_v12 = vadd.f32 1.0, %v1867_v44 }
 0x528   : > { %1868 = vrcp.f32 %v1621_v12 }
 0x532   : > { %v1869_v25 = vpop.eup %1868 }
 0x533   : > { %v1627_v56 = vrot.slane %v1869_v25, %v1626_v0 }
 0x535   : > { %v1628_v42 = vmul.f32 %v1627_v56, %v2532_v53  ;;  %v1629_v48 = vmul.f32 %v1627_v56, %v2530_v55  ;;  %v1630_v33 = vmul.f32 %v1627_v56, %v2536_v17  ;;  %v1631_v54 = vmul.f32 %v1627_v56, %v1464_v62 }
 0x536   : > { %v1632_v39 = vmul.f32 %v1627_v56, %v1465_v18  ;;  %v1633_v57 = vmul.f32 %v1627_v56, %v1466_v2  ;;  %v1634_v23 = vmul.f32 %v1627_v56, %v1467_v51  ;;  %v1635_v43 = vmul.f32 %v1627_v56, %v1468_v34 }
 0x537   : > { %v1636_v59 = vadd.f32 %v1628_v42, %v1978_v3  ;;  %v1637_v49 = vadd.f32 %v1629_v48, %v1980_v4  ;;  %v1638_v30 = vadd.f32 %v1630_v33, %v1987_v7  ;;  %v1639_v19 = vadd.f32 %v1631_v54, %v1989_v8 }
 0x538   : > { %v1640_v55 = vadd.f32 %v1632_v39, %v1992_v9  ;;  %v1641_v53 = vadd.f32 %v1633_v57, %v1994_v10  ;;  %v1642_v17 = vadd.f32 %v1634_v23, %v2002_v13  ;;  %v1643_v62 = vadd.f32 %v1635_v43, %v2004_v14 }
 0x539   : > { %v1644_v3 = vmax.f32 %v1636_v59, 0.0  ;;  %v1645_v18 = vmax.f32 %v1637_v49, 0.0  ;;  %v1646_v4 = vmax.f32 %v1638_v30, 0.0  ;;  %v1647_v31 = vmax.f32 %v1639_v19, 0.0 }
 0x53a   : > { %v1648_v7 = vmax.f32 %v1640_v55, 0.0  ;;  %v1649_v47 = vmax.f32 %v1641_v53, 0.0  ;;  %v1650_v8 = vmax.f32 %v1642_v17, 0.0  ;;  %v1651_v51 = vmax.f32 %v1643_v62, 0.0 }
 0x53b   : > { %1652 = vst.msk [vmem:[%s415_s26] sm:$0xff] %vm2652_vm3, %v1644_v3 }
 0x53c   : > { %1653 = vst.msk [vmem:[%s415_s26 + $0x8] sm:$0xff] %vm2653_vm0, %v1645_v18 }
 0x53d   : > { %1654 = vst.msk [vmem:[%s415_s26 + $0x10] sm:$0xff] %vm2654_vm4, %v1646_v4 }
 0x53e   : > { %1655 = vst.msk [vmem:[%s415_s26 + $0x18] sm:$0xff] %vm2655_vm5, %v1647_v31 }
 0x53f   : > { %1656 = vst.msk [vmem:[%s415_s26 + $0x20] sm:$0xff] %vm2656_vm6, %v1648_v7 }
 0x540   : > { %1657 = vst.msk [vmem:[%s415_s26 + $0x28] sm:$0xff] %vm2657_vm8, %v1649_v47 }
 0x541   : > { %1658 = vst.msk [vmem:[%s415_s26 + $0x30] sm:$0xff] %vm2658_vm9, %v1650_v8 }
 0x542   : > { %1659 = vst.msk [vmem:[%s415_s26 + $0x38] sm:$0xff] %vm2659_vm7, %v1651_v51 }
 0x543 PF: > { %s22_s21 = sadd.s32 1, %s1876_s21  }
 0x544   : > { %p19_p4 = scmp.ge.s32.totalorder %s22_s21, 4  }
 0x546   :  { %21 = sbr.rel (!%p19_p4) target bundleno = 1 (0x1), region = 98 }

</bundles_post_ra>
